<compile_context>
chip_gen: v6e
topology: v6e:2x2x1
jax: 0.10.0
libtpu: 0.0.40
codegen_flags: <defaults>
</compile_context>

<pallas_src>
import numpy as np
import jax
import jax.numpy as jnp
from jax.experimental import pallas as pl
from jax.experimental.pallas import tpu as pltpu


def _make_kernel(C, K, CHUNK):
    def kernel(feat_ref, ind_ref, mask_ref, tgt_ref, numer_ref, acc_ref):
        c_idx = pl.program_id(1)

        @pl.when(c_idx == 0)
        def _init():
            acc_ref[...] = jnp.zeros_like(acc_ref)

        feat = feat_ref[0]                                    # (C, CHUNK)
        idx = ind_ref[0]                                      # (K, 1) int32

        # Shift the K indices (cheap) instead of the K*CHUNK iota (expensive).
        local_idx = idx - c_idx * CHUNK                       # (K, 1)
        pix = jax.lax.broadcasted_iota(jnp.int32, (K, CHUNK), 1)
        one_hot = (pix == local_idx).astype(jnp.float32)      # (K, CHUNK)

        # Partial gather for this HW chunk: (C, CHUNK) x (K, CHUNK)^T -> (C, K)
        acc_ref[...] += jax.lax.dot_general(
            feat, one_hot,
            dimension_numbers=(((1,), (1,)), ((), ())),
            preferred_element_type=jnp.float32)

        @pl.when(c_idx == pl.num_programs(1) - 1)
        def _finalize():
            msk = mask_ref[0]                                 # (C, K)
            tgt = tgt_ref[0]                                  # (C, K)
            pred = acc_ref[...]                               # (C, K)
            diff = jnp.abs(pred * msk - tgt * msk)
            numer_ref[0] = jnp.sum(diff, keepdims=True)       # (1, 1)

    return kernel


def reg_weighted_l1_loss_pallas(output, mask, ind, target, hw_chunk=2048):
    """Forward pass of RegWeightedL1Loss.

    output: [B, C, H, W] float  — regression feature map
    mask:   [B, K, C]    float  — per-object, per-channel validity weights
    ind:    [B, K]       int    — flat spatial index (y*W + x) per object
    target: [B, K, C]    float  — regression targets
    """
    B, C, H, W = output.shape
    K = ind.shape[1]
    HW = H * W
    assert mask.shape == (B, K, C) and target.shape == (B, K, C)

    feat = output.reshape(B, C, HW).astype(jnp.float32)       # no NHWC transpose

    # HW chunking: keep lane-aligned chunks; pad with zeros (never selected
    # since ind < HW, and 0 * one_hot contributes nothing).
    if HW <= hw_chunk:
        hw_chunk = ((HW + 127) // 128) * 128
    hw_pad = ((HW + hw_chunk - 1) // hw_chunk) * hw_chunk
    if hw_pad != HW:
        feat = jnp.pad(feat, ((0, 0), (0, 0), (0, hw_pad - HW)))
    num_chunks = hw_pad // hw_chunk

    ind3 = ind.astype(jnp.int32).reshape(B, K, 1)
    mask_f = mask.astype(jnp.float32)
    mask_ck = jnp.transpose(mask_f, (0, 2, 1))                # (B, C, K)
    tgt_ck = jnp.transpose(target.astype(jnp.float32), (0, 2, 1))

    kernel = _make_kernel(C, K, hw_chunk)
    grid_spec = pltpu.PrefetchScalarGridSpec(
        num_scalar_prefetch=0,
        grid=(B, num_chunks),
        in_specs=[
            pl.BlockSpec((1, C, hw_chunk), lambda b, c: (b, 0, c)),  # feat chunk
            pl.BlockSpec((1, K, 1), lambda b, c: (b, 0, 0)),         # indices
            pl.BlockSpec((1, C, K), lambda b, c: (b, 0, 0)),         # mask (C,K)
            pl.BlockSpec((1, C, K), lambda b, c: (b, 0, 0)),         # target (C,K)
        ],
        out_specs=pl.BlockSpec((1, 1, 1), lambda b, c: (b, 0, 0)),   # per-batch numer
        scratch_shapes=[pltpu.VMEM((C, K), jnp.float32)],            # pred accumulator
    )
    numer = pl.pallas_call(
        kernel,
        grid_spec=grid_spec,
        out_shape=jax.ShapeDtypeStruct((B, 1, 1), jnp.float32),
        compiler_params=pltpu.CompilerParams(
            dimension_semantics=("parallel", "arbitrary")),
    )(feat, ind3, mask_ck, tgt_ck)

    # loss = l1_loss(pred*mask, target*mask, reduction='sum') / (mask.sum() + 1e-4)
    # mask.sum() does not need the kernel at all.
    return jnp.sum(numer) / (jnp.sum(mask_f) + 0.0001)


def _reference_loss(output, mask, ind, target):
    """Pure-JAX reference mirroring the PyTorch module."""
    B, C, H, W = output.shape
    feat = jnp.transpose(output, (0, 2, 3, 1)).reshape(B, H * W, C)
    pred = jnp.take_along_axis(feat, ind[:, :, None].astype(jnp.int32), axis=1)
    m = mask.astype(jnp.float32)
    loss = jnp.sum(jnp.abs(pred * m - target * m))
    return loss / (jnp.sum(m) + 0.0001)


if __name__ == "__main__":
    B, C, H, W, K = 2, 4, 16, 16, 8

    key = jax.random.PRNGKey(0)
    k1, k2, k3, k4 = jax.random.split(key, 4)
    output = jax.random.normal(k1, (B, C, H, W), dtype=jnp.float32)
    ind = jax.random.randint(k2, (B, K), 0, H * W, dtype=jnp.int32)
    mask = (jax.random.uniform(k3, (B, K, C)) > 0.3).astype(jnp.float32)
    target = jax.random.normal(k4, (B, K, C), dtype=jnp.float32)

    loss = reg_weighted_l1_loss_pallas(output, mask, ind, target)
    jax.block_until_ready(loss)

    ref = _reference_loss(output, mask, ind, target)
    np.testing.assert_allclose(np.asarray(loss), np.asarray(ref), rtol=1e-4, atol=1e-5)

    print("KERNEL_OK")
</pallas_src>

<mosaic_0001>
module attributes {stable_mosaic.version = 11 : i64} {
  func.func @kernel(%arg0: i32, %arg1: i32, %arg2: memref<1x4x256xf32, #tpu.memory_space<vmem>>, %arg3: memref<1x8x1xi32, #tpu.memory_space<vmem>>, %arg4: memref<1x4x8xf32, #tpu.memory_space<vmem>>, %arg5: memref<1x4x8xf32, #tpu.memory_space<vmem>>, %arg6: memref<1x1x1xf32, #tpu.memory_space<vmem>>, %arg7: memref<4x8xf32, #tpu.memory_space<vmem>>) attributes {dimension_semantics = [#tpu.dimension_semantics<parallel>, #tpu.dimension_semantics<arbitrary>], iteration_bounds = array<i64: 2, 1>, scalar_prefetch = 0 : i64, scratch_operands = 1 : i64, tpu.core_type = #tpu.core_type<tc>, window_params = [{transform_indices = @transform_0, window_bounds = array<i64: 1, 4, 256>}, {transform_indices = @transform_1, window_bounds = array<i64: 1, 8, 1>}, {transform_indices = @transform_2, window_bounds = array<i64: 1, 4, 8>}, {transform_indices = @transform_3, window_bounds = array<i64: 1, 4, 8>}, {transform_indices = @transform_4, window_bounds = array<i64: 1, 1, 1>}]} {
    %c0_i32 = arith.constant 0 : i32
    %0 = arith.cmpi eq, %arg1, %c0_i32 : i32
    %1 = arith.extui %0 : i1 to i32
    %c0_i32_0 = arith.constant 0 : i32
    %2 = arith.cmpi ne, %1, %c0_i32_0 : i32
    scf.if %2 {
      %cst_12 = arith.constant 0.000000e+00 : f32
      %22 = vector.broadcast %cst_12 : f32 to vector<4x8xf32>
      %c0_13 = arith.constant 0 : index
      %c0_14 = arith.constant 0 : index
      %23 = vector.load %arg7[%c0_13, %c0_14] : memref<4x8xf32, #tpu.memory_space<vmem>>, vector<4x8xf32>
      tpu.vector_store %arg7[%c0_13, %c0_14], %22 {strides = array<i32>} : memref<4x8xf32, #tpu.memory_space<vmem>>, vector<4x8xf32>,
    } else {
    }
    %c0 = arith.constant 0 : index
    %c0_1 = arith.constant 0 : index
    %c0_2 = arith.constant 0 : index
    %3 = vector.load %arg2[%c0, %c0_1, %c0_2] : memref<1x4x256xf32, #tpu.memory_space<vmem>>, vector<1x4x256xf32>
    %4 = vector.shape_cast %3 : vector<1x4x256xf32> to vector<4x256xf32>
    %c0_3 = arith.constant 0 : index
    %c0_4 = arith.constant 0 : index
    %c0_5 = arith.constant 0 : index
    %5 = vector.load %arg3[%c0_3, %c0_4, %c0_5] : memref<1x8x1xi32, #tpu.memory_space<vmem>>, vector<1x8x1xi32>
    %6 = vector.shape_cast %5 : vector<1x8x1xi32> to vector<8x1xi32>
    %c256_i32 = arith.constant 256 : i32
    %7 = arith.muli %arg1, %c256_i32 : i32
    %8 = vector.broadcast %7 : i32 to vector<8x1xi32>
    %9 = arith.subi %6, %8 : vector<8x1xi32>
    %10 = tpu.iota {dimensions = array<i32: 1>} : vector<8x256xi32>
    %11 = vector.broadcast %9 : vector<8x1xi32> to vector<8x256xi32>
    %12 = arith.cmpi eq, %10, %11 : vector<8x256xi32>
    %13 = arith.extui %12 : vector<8x256xi1> to vector<8x256xi32>
    %14 = arith.sitofp %13 : vector<8x256xi32> to vector<8x256xf32>
    %c0_6 = arith.constant 0 : index
    %c0_7 = arith.constant 0 : index
    %15 = vector.load %arg7[%c0_6, %c0_7] : memref<4x8xf32, #tpu.memory_space<vmem>>, vector<4x8xf32>
    %cst = arith.constant dense<0.000000e+00> : vector<4x8xf32>
    %16 = tpu.matmul %4, %14, %cst {dimension_numbers = #tpu.dot_dimension_numbers<[1], [1], [0], [0], [0, 0, 1, 0], [], []>} : vector<4x256xf32>, vector<8x256xf32>, vector<4x8xf32> -> vector<4x8xf32>
    %17 = arith.addf %15, %16 : vector<4x8xf32>
    %c0_8 = arith.constant 0 : index
    %c0_9 = arith.constant 0 : index
    %18 = vector.load %arg7[%c0_8, %c0_9] : memref<4x8xf32, #tpu.memory_space<vmem>>, vector<4x8xf32>
    tpu.vector_store %arg7[%c0_8, %c0_9], %17 {strides = array<i32>} : memref<4x8xf32, #tpu.memory_space<vmem>>, vector<4x8xf32>,
    %c0_i32_10 = arith.constant 0 : i32
    %19 = arith.cmpi eq, %arg1, %c0_i32_10 : i32
    %20 = arith.extui %19 : i1 to i32
    %c0_i32_11 = arith.constant 0 : i32
    %21 = arith.cmpi ne, %20, %c0_i32_11 : i32
    scf.if %21 {
      %c0_12 = arith.constant 0 : index
      %c0_13 = arith.constant 0 : index
      %c0_14 = arith.constant 0 : index
      %22 = vector.load %arg4[%c0_12, %c0_13, %c0_14] : memref<1x4x8xf32, #tpu.memory_space<vmem>>, vector<1x4x8xf32>
      %23 = vector.shape_cast %22 : vector<1x4x8xf32> to vector<4x8xf32>
      %c0_15 = arith.constant 0 : index
      %c0_16 = arith.constant 0 : index
      %c0_17 = arith.constant 0 : index
      %24 = vector.load %arg5[%c0_15, %c0_16, %c0_17] : memref<1x4x8xf32, #tpu.memory_space<vmem>>, vector<1x4x8xf32>
      %25 = vector.shape_cast %24 : vector<1x4x8xf32> to vector<4x8xf32>
      %c0_18 = arith.constant 0 : index
      %c0_19 = arith.constant 0 : index
      %26 = vector.load %arg7[%c0_18, %c0_19] : memref<4x8xf32, #tpu.memory_space<vmem>>, vector<4x8xf32>
      %27 = arith.mulf %26, %23 : vector<4x8xf32>
      %28 = arith.mulf %25, %23 : vector<4x8xf32>
      %29 = arith.subf %27, %28 : vector<4x8xf32>
      %30 = math.absf %29 : vector<4x8xf32>
      %31 = vector.shape_cast %30 : vector<4x8xf32> to vector<1x4x8xf32>
      %cst_20 = arith.constant dense<0.000000e+00> : vector<1xf32>
      %32 = vector.multi_reduction <add>, %31, %cst_20 [1, 2] : vector<1x4x8xf32> to vector<1xf32>
      %33 = vector.shape_cast %32 : vector<1xf32> to vector<1x1x1xf32>
      %34 = vector.extract %33[0, 0, 0] : f32 from vector<1x1x1xf32>
      %35 = vector.broadcast %34 : f32 to vector<1x1xf32>
      %c0_21 = arith.constant 0 : index
      %c0_22 = arith.constant 0 : index
      %c0_23 = arith.constant 0 : index
      %36 = vector.load %arg6[%c0_21, %c0_22, %c0_23] : memref<1x1x1xf32, #tpu.memory_space<vmem>>, vector<1x1x1xf32>
      %37 = vector.shape_cast %36 : vector<1x1x1xf32> to vector<1x1xf32>
      %38 = vector.shape_cast %35 : vector<1x1xf32> to vector<1x1x1xf32>
      tpu.vector_store %arg6[%c0_21, %c0_22, %c0_23], %38 {strides = array<i32>} : memref<1x1x1xf32, #tpu.memory_space<vmem>>, vector<1x1x1xf32>,
    } else {
    }
    return
  }
  func.func @transform_0(%arg0: i32, %arg1: i32) -> (i32, i32, i32) {
    %c0_i32 = arith.constant 0 : i32
    %c0_i32_0 = arith.constant 0 : i32
    return %arg0, %c0_i32, %arg1 : i32, i32, i32
  }
  func.func @transform_1(%arg0: i32, %arg1: i32) -> (i32, i32, i32) {
    %c0_i32 = arith.constant 0 : i32
    %c0_i32_0 = arith.constant 0 : i32
    %c0_i32_1 = arith.constant 0 : i32
    return %arg0, %c0_i32, %c0_i32_0 : i32, i32, i32
  }
  func.func @transform_2(%arg0: i32, %arg1: i32) -> (i32, i32, i32) {
    %c0_i32 = arith.constant 0 : i32
    %c0_i32_0 = arith.constant 0 : i32
    %c0_i32_1 = arith.constant 0 : i32
    return %arg0, %c0_i32, %c0_i32_0 : i32, i32, i32
  }
  func.func @transform_3(%arg0: i32, %arg1: i32) -> (i32, i32, i32) {
    %c0_i32 = arith.constant 0 : i32
    %c0_i32_0 = arith.constant 0 : i32
    %c0_i32_1 = arith.constant 0 : i32
    return %arg0, %c0_i32, %c0_i32_0 : i32, i32, i32
  }
  func.func @transform_4(%arg0: i32, %arg1: i32) -> (i32, i32, i32) {
    %c0_i32 = arith.constant 0 : i32
    %c0_i32_0 = arith.constant 0 : i32
    %c0_i32_1 = arith.constant 0 : i32
    return %arg0, %c0_i32, %c0_i32_0 : i32, i32, i32
  }
}

</mosaic_0001>

<bundles_post_ra>
// kernel: tpu_custom_call.1
= control target key start
LH: loop header
LB: loop body
LE: loop exit
PB: predicated region body
PF: predicated region fallthrough
CT: control target
= control target key end

     0   :  { %9 = vsyncpa [#allocation4], 0  ;;  %s931_s0 = inlined_call_operand.vmem [shape: f32[2,4,256], index: 0, kind: input, shape index: {}]   ;;  %s932_s1 = inlined_call_operand.vmem [shape: s32[2,8,1], index: 1, kind: input, shape index: {}]   ;;  %s933_s2 = inlined_call_operand.hbm [shape: f32[2,4,8], index: 2, kind: input, shape index: {}]   ;;  %s934_s3 = inlined_call_operand.hbm [shape: f32[2,4,8], index: 3, kind: input, shape index: {}]   ;;  %s935_s4 = inlined_call_operand.vmem [shape: f32[2,1,1], index: 4, kind: output, shape index: {}]  }
   0x1   :  { %11 = vsyncpa [#allocation4 + $0x1], 0 }
   0x2   :  { %12 = vsyncpa [#allocation6], 0 }
   0x3   :  { %14 = vsyncpa [#allocation6 + $0x1], 0  ;;  %s786_s15 = smov 0   ;;  %s788_s16 = smov 0  }
   0x4   :  { %s790_s17 = smov 0   ;;  %s792_s18 = smov 0  }
   0x5   :  { %s794_s19 = smov 0   ;;  %s796_s20 = smov 0  }
   0x6 LB: > { %s556_s21 = sadd.s32 4294967295, %s754_s20   ;;  %s32_s22 = sadd.s32 1, %s750_s19  ;;  %s754_s20 = sphi %s796_s20, %s20_s20   ;;  %s750_s19 = sphi %s794_s19, %s944_s19   ;;  %s746_s18 = sphi %s792_s18, %s943_s18   ;;  %s742_s17 = sphi %s790_s17, %s942_s17   ;;  %s738_s16 = sphi %s788_s16, %s941_s16   ;;  %s734_s15 = sphi %s786_s15, %s940_s15  }
   0x7   : > { %p34_p0 = scmp.ge.s32.totalorder %s32_s22, 2  ;;  %s93_s23 = sadd.s32 1, %s742_s17 }
   0x8   : > { %p100_p1 = scmp.ne.s32.totalorder %s742_s17, %s738_s16  ;;  %p101_p2 = scmp.eq.s32.totalorder %s754_s20, 0 }
   0x9   : > { %s946_s22 = smov (%p34_p0, %s32_s22), 0  ;;  %p106_p4 = scmp.ne.s32.totalorder %s738_s16, %s734_s15 }
   0xa   : > { %p822_p3 = por %p101_p2, %p100_p1  ;;  %s90_s25 = ssub.s32 %s750_s19, %s946_s22 }
   0xb   : > { %p107_p5 = scmp.eq.s32.totalorder %s556_s21, 0  ;;  %p91_p6 = scmp.eq.s32.totalorder %s90_s25, 0 }
   0xc   : > { %p590_p8 = scmp.lt.s32.totalorder %s754_s20, 2  ;;  %s838_s28 = sand.u32 1, %s742_s17  }
   0xd   : > { %p829_p7 = por %p107_p5, %p106_p4  ;;  %s561_s29 = sshll.u32 %s750_s19, 6 }
   0xe   : > { %s835_s27 = scalar_select %p91_p6, %s742_s17, %s93_s23  }
   0xf   : > { %s560_s30 = sshll.u32 %s838_s28, 2  ;;  %s211_s7 = scalar_lea.hbm %s933_s2, %s561_s29 }
  0x10   : > { %s206_s8 = scalar_lea.vmem [#allocation3], %s560_s30  ;;  %p847_p9 = pnand %p590_p8, %p822_p3 }
  0x11   : > { %s213_s9 = sshll.u32 %s206_s8, 4  ;;  %p564_p10 = scmp.ge.s32.totalorder %s754_s20, 1  ;;  %s214_s9 = int_to_ptr.vmem [resolvable:$true] %s213_s9 }
  0x12   : > { %p236_p11 = scmp.lt.s32.totalorder %s754_s20, 3  ;;  %s203_s11 = scalar_lea.sflag [#allocation4], %s838_s28 }
  0x13   : > { %p646_p12 = pneg %p847_p9  ;;  %s657_s12 = scalar_lea.vmem %s214_s9, 64 }
  0x14   : > { %p658_p13 = scmp.ne.s32.totalorder %s214_s9, %s657_s12  ;;  %s756_s13 = smov [#allocation3]  }
  0x15   : > { %s662_s14 = sshll.u32 %s756_s13, 4  ;;  %s663_s14 = int_to_ptr.vmem [resolvable:$false] %s662_s14 }
  0x16   : > { %p660_p0 = pnand %p658_p13, %p646_p12  ;;  %s664_s15 = scalar_lea.vmem %s663_s14, 128 }
  0x17   : > { %p665_p2 = scmp.lt.s32.totalorder %s214_s9, %s663_s14  ;;  %p666_p3 = scmp.lt.s32.totalorder %s664_s15, %s657_s12 }
  0x18   : > { %p661_p1 = pneg %p660_p0 }
  0x19   : > { %p667_p4 = por %p666_p3, %p665_p2 }
  0x1b   : > { %p668_p5 = pnand %p667_p4, %p661_p1 }
  0x1d   : > { %671 = shalt.err (!%p668_p5)
}
  0x1e   : > { %586 = dma.hbm_to_vmem [thread:$0]  (!%p847_p9), %s211_s7, 64, %s214_s9, %s203_s11  }
  0x1f   : > { %p865_p6 = pnand %p564_p10, %p236_p11  ;;  %s229_s25 = scalar_lea.hbm %s934_s3, %s561_s29 }
  0x20   : > { %s224_s5 = scalar_lea.vmem [#allocation5], %s560_s30  ;;  %s221_s8 = scalar_lea.sflag [#allocation6], %s838_s28 }
  0x21   : > { %s231_s6 = sshll.u32 %s224_s5, 4  ;;  %s757_s7 = smov [#allocation5]   ;;  %s232_s6 = int_to_ptr.vmem [resolvable:$true] %s231_s6 }
  0x22   : > { %s685_s12 = scalar_lea.vmem %s232_s6, 64  ;;  %s690_s9 = sshll.u32 %s757_s7, 4  ;;  %s691_s9 = int_to_ptr.vmem [resolvable:$false] %s690_s9 }
  0x23   : > { %p686_p8 = scmp.ne.s32.totalorder %s232_s6, %s685_s12  ;;  %s692_s11 = scalar_lea.vmem %s691_s9, 128 }
  0x24   : > { %p693_p10 = scmp.lt.s32.totalorder %s232_s6, %s691_s9  ;;  %p694_p11 = scmp.lt.s32.totalorder %s692_s11, %s685_s12 }
  0x25   : > { %p688_p13 = pnand %p686_p8, %p646_p12 }
  0x26   : > { %p695_p1 = por %p694_p11, %p693_p10 }
  0x27   : > { %p689_p0 = pneg %p688_p13 }
  0x29   : > { %p696_p2 = pnand %p695_p1, %p689_p0 }
  0x2b   : > { %699 = shalt.err (!%p696_p2)
}
  0x2c   : > { %589 = dma.hbm_to_vmem [thread:$0]  (!%p847_p9), %s229_s25, 64, %s232_s6, %s221_s8  }
  0x2d   : > { %240 = sbr.rel (%p865_p6) target bundleno = 600 (0x258), region = 36  ;;  %s242_s28 = sand.u32 (!%p865_p6), 1, %s738_s16  }
  0x2e   : > { %s565_s29 = sshll.u32 (!%p865_p6), %s242_s28, 2  ;;  %s243_s30 = scalar_lea.sflag (!%p865_p6), [#allocation4], %s242_s28 }
  0x2f   : > { %s881_s13 = scalar_lea.vmem (!%p865_p6), [#allocation3], %s565_s29 }
  0x32   : > { %725 = dma.done.wait (%p829_p7), %s243_s30, 64  }
  0x33   : > { %727 = vsyncadd (%p829_p7), %s243_s30, 4294967232  ;;  %s252_s14 = scalar_lea.sflag [#allocation6], %s242_s28  ;;  %s887_s15 = scalar_lea.vmem [#allocation5], %s565_s29 }
  0x34   : > { %729 = dma.done.wait (%p829_p7), %s252_s14, 64  }
  0x35   : > { %731 = vsyncadd (%p829_p7), %s252_s14, 4294967232  ;;  %p297_p9 = scmp.lt.s32.totalorder %s746_s18, 1  ;;  %v758_v0 = vmov 0   ;;  %vm317_vm0 = vcmask 60416   ;;  %v759_v4 = vmov 0.0   ;;  %v324_v5 = vlaneseq }
  0x36   : > { %642 = vset.pattern.permute.xlu0 %v758_v0  ;;  %318 = vst.msk [vmem:[#allocation2] sm:$0xf] %vm317_vm0, %v759_v4  ;;  %v760_v9 = vmov 1.0   ;;  %v416_v14 = vld [vmem:[%s881_s13] sm:$0xf]  ;;  %vm434_vm3 = vcmask 0  }
  0x37   : > { %s948_s18 = smov (!%p297_p9, %s746_s18), 1  ;;  %v325_v6 = vand.u32 127, %v324_v5  ;;  %v417_v15 = vld [vmem:[%s887_s15] sm:$0xf] }
  0x38   : > { %s576_s10 = sshll.u32 %s948_s18, 3  ;;  %v420_v16 = vmul.f32 %v417_v15, %v416_v14  ;;  %s312_s12 = scalar_lea.vmem %s935_s4, %s948_s18 }
  0x39   : > { %s309_s24 = scalar_lea.vmem %s932_s1, %s576_s10  ;;  %s304_s6 = scalar_lea.vmem %s931_s0, %s576_s10  ;;  %v326_v7 = vadd.s32 128, %v325_v6 }
  0x3a   : > { %v320_v1 = vld [vmem:[%s309_s24] sm:$0xff] }
  0x3b   : > { %v319_v2 = vld [vmem:[%s304_s6] sm:$0xff]  ;;  %328 = vperm.xlu0 %642, %v320_v1  }
  0x3c   : > { %v338_v3 = vcombine.high %v319_v2, %v319_v2 }
  0x3d   : > { %v336_v10 = vld [vmem:[#allocation2] sm:$0xf] }
  0x3e   : > { %404 = vmatprep.mubr.f32.mxu0 %v338_v3 }
  0xb6   : > { %v329_v8 = vpop.permute.xlu0 %328 }
  0xb7   : > { %vm331_vm1 = vcmp.eq.s32.totalorder %v326_v7, %v329_v8  ;;  %vm330_vm2 = vcmp.eq.s32.totalorder %v325_v6, %v329_v8 }
  0xb8   : > { %572 = vmatprep.subr.msk.mxu0 %vm331_vm1, %v760_v9 }
  0xb9   : > { %573 = vmatpush1.xpose.msk.msra.mxu0 %vm330_vm2, %v760_v9 }
  0xbc   : > { %405 = vmatmul.mubr.f32.vlgmr.msra.gmra.mxu0 %v319_v2 }
 0x17c   : > { %v406_v11 = vpop.f32.mrf.mxu0 }
 0x17d   : > { %v410_v12 = vadd.f32 %v406_v11, %v336_v10 }
 0x17e   : > { %v408_v13 = vpop.f32.mrf.mxu0 }
 0x17f   : > { %412 = vst.msk [vmem:[#allocation2] sm:$0xf] %vm317_vm0, %v410_v12 }
 0x186   : > { %v418_v17 = vld [vmem:[#allocation2] sm:$0xf] }
 0x187   : > { %v419_v18 = vmul.f32 %v418_v17, %v416_v14 }
 0x189   : > { %v421_v19 = vsub.f32 %v419_v18, %v420_v16 }
 0x18b   : > { %v422_v20 = vand.u32 2147483647, %v421_v19 }
 0x18d   : > { %v423_v21 = vsel %vm317_vm0, %v422_v20, 0.0 }
 0x18e   : > { %424 = vadd.xlane.f32.xlu0 %v423_v21 }
 0x217   : > { %v425_v22 = vpop.xlane.xlu0 %424 }
 0x218   : > { %v426_v23 = vrot.slane %v425_v22, 4 }
 0x21a   : > { %v427_v24 = vadd.f32 %v426_v23, %v425_v22 }
 0x21c   : > { %v428_v25 = vrot.slane %v427_v24, 2 }
 0x21e   : > { %v429_v26 = vadd.f32 %v428_v25, %v427_v24 }
 0x220   : > { %v430_v27 = vrot.slane %v429_v26, 1 }
 0x222   : > { %v431_v28 = vadd.f32 %v430_v27, %v429_v26 }
 0x224   : > { %577 = vpush %v431_v28 }
 0x255   : > { %s578_s7 = spop %577 }
 0x256   : > { %v433_v29 = vstv %s578_s7 }
 0x257   : > { %435 = vst.msk [vmem:[%s312_s12] sm:$0x1] %vm434_vm3, %v433_v29 }
 0x258 PF: > { %s20_s20 = sadd.s32 1, %s754_s20   ;;  %s940_s15 = smov %s738_s16 }
 0x259   : > { %p17_p7 = scmp.ge.s32.totalorder %s20_s20, 4   ;;  %s941_s16 = smov %s742_s17 }
 0x25a   : > { %s942_s17 = smov %s835_s27  ;;  %s943_s18 = smov %s750_s19 }
 0x25b   : > { %s944_s19 = smov %s946_s22  ;;  %19 = sbr.rel (!%p17_p7) target bundleno = 6 (0x6), region = 103 }
 0x260   :  { %453 = vsyncpa [#allocation4], 1 }
 0x261   :  { %455 = vsyncpa [#allocation4 + $0x1], 1 }
 0x262   :  { %456 = vsyncpa [#allocation6], 1 }
 0x263   :  { %458 = vsyncpa [#allocation6 + $0x1], 1 }

</bundles_post_ra>
